<compile_context>
chip_gen: v5e
topology: v5e:2x2
jax: 0.10.0
libtpu: 0.0.40
codegen_flags: <defaults>
</compile_context>

<pallas_src>
import jax
import jax.numpy as jnp
from jax.experimental import pallas as pl
from jax.experimental.pallas import tpu as pltpu

# ---- small, module-consistent sizes -------------------------------------
N_BATCH = 2
C_IN = 16
L_IN = 32
N1x1, N3x3, N5x5, N7x7, POOL = 32, 32, 32, 16, 16
C_OUT = N1x1 + N3x3 + N5x5 + N7x7 + POOL          # = 128 (lane-dense output)
EPS = 1e-5


# --------------------------------------------------------------------------
# Kernel: entire Inception block, one invocation, batch folded into M.
# --------------------------------------------------------------------------
def _make_kernel(seq_len, off):
    o1, o2, o3, o4 = off[1], off[2], off[3], off[4]   # 32, 64, 96, 112

    def kernel(x_ref, w0_ref, w1_ref, w2_ref, w3_ref, b_ref, o_ref):
        m, C = o_ref.shape

        # biases: one (4, C) table, one row per fused stage
        b0 = b_ref[0:1, :]
        b1 = b_ref[1:2, :]
        b2 = b_ref[2:3, :]
        b3 = b_ref[3:4, :]

        # per-sample boundary masks for the k=3 (padding=1) taps — built ONCE
        # at full (m, C) width and reused by all three k=3 stages.
        row = jax.lax.broadcasted_iota(jnp.int32, (m, 1), 0)
        not_first = jnp.broadcast_to((row % seq_len) != 0, (m, C))
        not_last = jnp.broadcast_to((row % seq_len) != (seq_len - 1), (m, C))

        def taps3(t):
            # t: (m, C) f32.  Build [x[l-1] | x[l] | x[l+1]] along lanes.
            # Rolls wrap across sample boundaries; the masks zero those rows
            # (== zero padding).  Concat offsets are 128-aligned -> no lane
            # shuffles.  Elementwise math stays f32 (v5e-friendly); cast to
            # bf16 only right before the MXU.
            tm = jnp.where(not_first, pltpu.roll(t, shift=1, axis=0), 0.0)
            tp = jnp.where(not_last, pltpu.roll(t, shift=m - 1, axis=0), 0.0)
            return jnp.concatenate([tm, t, tp], axis=-1).astype(jnp.bfloat16)

        def cbr(taps, w_ref, bias):
            y = jnp.dot(taps, w_ref[...], preferred_element_type=jnp.float32)
            return jnp.maximum(y + bias, 0.0)

        # stage 0: all five 1x1 convs fused into ONE matmul (K = C_IN)
        y0 = cbr(x_ref[...], w0_ref, b0)          # cols: y1 | b3_0 | b5_0 | b7_0 | y5
        # stage 1: b3[1] + b5[1] + b7[1] (block-diagonal weight, shared rolls)
        s1 = cbr(taps3(y0), w1_ref, b1)           # cols 32:112 live (b3f | b5m | b7m)
        # stage 2: b5[2] + b7[2]
        s2 = cbr(taps3(s1), w2_ref, b2)           # cols 64:112 live (b5f | b7m2)
        # stage 3: b7[3]
        s3 = cbr(taps3(s2), w3_ref, b3)           # cols 96:112 live (b7f)

        # final combine: every stage already placed its outputs at the final
        # column offsets, so 3 lane-mask selects replace the 5-way lane concat;
        # the store is a single unmasked lane-dense vst.
        lane = jax.lax.broadcasted_iota(jnp.int32, (1, C), 1)
        out = jnp.where((lane >= o1) & (lane < o4), s1, y0)
        out = jnp.where((lane >= o2) & (lane < o4), s2, out)
        out = jnp.where((lane >= o3) & (lane < o4), s3, out)
        o_ref[...] = out

    return kernel


# --------------------------------------------------------------------------
# Parameters (PyTorch layouts).
# --------------------------------------------------------------------------
def init_params(key):
    keys = jax.random.split(key, 11)

    def blk(k, cin, cout, ksize):
        k1, k2, k3, k4, k5, k6 = jax.random.split(k, 6)
        return dict(
            W=jax.random.normal(k1, (cout, cin, ksize), jnp.float32)
              / jnp.sqrt(cin * ksize),
            b=0.1 * jax.random.normal(k2, (cout,), jnp.float32),
            gamma=1.0 + 0.1 * jax.random.normal(k3, (cout,), jnp.float32),
            beta=0.1 * jax.random.normal(k4, (cout,), jnp.float32),
            mean=0.1 * jax.random.normal(k5, (cout,), jnp.float32),
            var=jax.random.uniform(k6, (cout,), jnp.float32,
                                   minval=0.5, maxval=1.5),
        )

    return dict(
        b1=blk(keys[0], C_IN, N1x1, 1),
        b3=[blk(keys[1], C_IN, N3x3, 1), blk(keys[2], N3x3, N3x3, 3)],
        b5=[blk(keys[3], C_IN, N5x5, 1), blk(keys[4], N5x5, N5x5, 3),
            blk(keys[5], N5x5, N5x5, 3)],
        b7=[blk(keys[6], C_IN, N7x7, 1), blk(keys[7], N7x7, N7x7, 3),
            blk(keys[8], N7x7, N7x7, 3), blk(keys[9], N7x7, N7x7, 3)],
        bp=blk(keys[10], C_IN, POOL, 1),
    )


def _prep_kernel_params(p):
    """Fold BN (eval) + conv bias, fuse per-stage branch weights into
    block-diagonal matrices at their final column offsets, cast to bf16."""
    def fold(cp):
        scale = cp["gamma"] / jnp.sqrt(cp["var"] + EPS)            # (Cout,)
        bias = cp["beta"] + scale * (cp["b"] - cp["mean"])         # (Cout,)
        # (Cout, Cin, K) -> (K, Cin, Cout), BN scale folded into the weight.
        w = jnp.transpose(cp["W"], (2, 1, 0)) * scale[None, None, :]
        return w, bias

    widths = [p["b1"]["W"].shape[0], p["b3"][-1]["W"].shape[0],
              p["b5"][-1]["W"].shape[0], p["b7"][-1]["W"].shape[0],
              p["bp"]["W"].shape[0]]
    off = [0]
    for w in widths:
        off.append(off[-1] + w)
    C = off[-1]                                   # 128 -> lane-dense output
    cin = p["b1"]["W"].shape[1]

    # stage 0: the five 1x1 convs as one (C_IN, C) weight
    W0 = jnp.zeros((cin, C), jnp.float32)
    b0 = jnp.zeros((C,), jnp.float32)
    for cp, s in [(p["b1"], 0), (p["b3"][0], 1), (p["b5"][0], 2),
                  (p["b7"][0], 3), (p["bp"], 4)]:
        w, b = fold(cp)
        W0 = W0.at[:, off[s]:off[s + 1]].set(w[0])
        b0 = b0.at[off[s]:off[s + 1]].set(b)

    def fused_k3(blocks):
        # (3*C, C) tap-major block-diagonal weight; zero weight rows/cols and
        # zero bias on padded columns keep them exactly 0 after ReLU.
        Wf = jnp.zeros((3, C, C), jnp.float32)
        bf = jnp.zeros((C,), jnp.float32)
        for cp, s in blocks:
            w, b = fold(cp)                                   # (3, width, width)
            Wf = Wf.at[:, off[s]:off[s + 1], off[s]:off[s + 1]].set(w)
            bf = bf.at[off[s]:off[s + 1]].set(b)
        return Wf.reshape(3 * C, C), bf

    W1, b1 = fused_k3([(p["b3"][1], 1), (p["b5"][1], 2), (p["b7"][1], 3)])
    W2, b2 = fused_k3([(p["b5"][2], 2), (p["b7"][2], 3)])
    W3, b3 = fused_k3([(p["b7"][3], 3)])

    weights = [W0.astype(jnp.bfloat16), W1.astype(jnp.bfloat16),
               W2.astype(jnp.bfloat16), W3.astype(jnp.bfloat16)]
    biases = jnp.stack([b0, b1, b2, b3], axis=0)              # (4, C) f32
    return weights, biases, tuple(off)


# --------------------------------------------------------------------------
# Wrapper: single gridless pallas_call, everything VMEM-resident.
# --------------------------------------------------------------------------
def inception_forward(x_ncl, params):
    n, c, l = x_ncl.shape
    weights, biases, off = _prep_kernel_params(params)
    c_out = off[-1]

    # channels-last, batch folded into M, bf16 cast done host-side.
    # TODO(synk): in a full model keep (N, L, C) end-to-end; these two wrapper
    # transposes are standalone HBM round-trips a fused consumer would avoid.
    x2 = jnp.transpose(x_ncl, (0, 2, 1)).reshape(n * l, c).astype(jnp.bfloat16)

    vmem = pl.BlockSpec(memory_space=pltpu.MemorySpace.VMEM)
    out = pl.pallas_call(
        _make_kernel(l, off),
        out_shape=jax.ShapeDtypeStruct((n * l, c_out), jnp.float32),
        in_specs=[vmem] * (1 + len(weights) + 1),
        out_specs=vmem,
    )(x2, *weights, biases)

    return out.reshape(n, l, c_out).transpose(0, 2, 1)        # back to (N, C, L)


# --------------------------------------------------------------------------
# Pure-JAX reference with PyTorch semantics (eval mode), for validation.
# --------------------------------------------------------------------------
def _basic_conv_ref(x, cp, pad):
    y = jax.lax.conv_general_dilated(
        x, cp["W"], window_strides=(1,), padding=[(pad, pad)],
        dimension_numbers=("NCH", "OIH", "NCH"),
        precision=jax.lax.Precision.HIGHEST)
    y = y + cp["b"][None, :, None]
    y = (y - cp["mean"][None, :, None]) / jnp.sqrt(cp["var"][None, :, None] + EPS)
    y = y * cp["gamma"][None, :, None] + cp["beta"][None, :, None]
    return jnp.maximum(y, 0.0)


def reference_forward(x, p):
    y1 = _basic_conv_ref(x, p["b1"], 0)
    t = _basic_conv_ref(x, p["b3"][0], 0)
    y2 = _basic_conv_ref(t, p["b3"][1], 1)
    t = _basic_conv_ref(x, p["b5"][0], 0)
    t = _basic_conv_ref(t, p["b5"][1], 1)
    y3 = _basic_conv_ref(t, p["b5"][2], 1)
    t = _basic_conv_ref(x, p["b7"][0], 0)
    t = _basic_conv_ref(t, p["b7"][1], 1)
    t = _basic_conv_ref(t, p["b7"][2], 1)
    y4 = _basic_conv_ref(t, p["b7"][3], 1)
    y5 = _basic_conv_ref(x, p["bp"], 0)   # b_pool is unused in the module's forward
    return jnp.concatenate([y1, y2, y3, y4, y5], axis=1)


if __name__ == "__main__":
    key = jax.random.PRNGKey(0)
    kx, kp = jax.random.split(key)
    params = init_params(kp)
    x = jax.random.normal(kx, (N_BATCH, C_IN, L_IN), jnp.float32)  # PyTorch NCL input

    out = jax.block_until_ready(inception_forward(x, params))
    ref = reference_forward(x, params)
    assert out.shape == (N_BATCH, C_OUT, L_IN)
    err = float(jnp.max(jnp.abs(out - ref)))
    # bf16 weights/activations on the MXU (f32 accumulate) vs f32 reference.
    if not jnp.allclose(out, ref, atol=5e-2, rtol=5e-2):
        raise AssertionError(f"mismatch vs reference, max abs diff={err}")
    print("KERNEL_OK")
</pallas_src>

<mosaic_0001>
module attributes {stable_mosaic.version = 11 : i64} {
  func.func @kernel(%arg0: memref<64x16xbf16, #tpu.memory_space<vmem>>, %arg1: memref<16x128xbf16, #tpu.memory_space<vmem>>, %arg2: memref<384x128xbf16, #tpu.memory_space<vmem>>, %arg3: memref<384x128xbf16, #tpu.memory_space<vmem>>, %arg4: memref<384x128xbf16, #tpu.memory_space<vmem>>, %arg5: memref<4x128xf32, #tpu.memory_space<vmem>>, %arg6: memref<64x128xf32, #tpu.memory_space<vmem>>) attributes {dimension_semantics = [], scalar_prefetch = 0 : i64, scratch_operands = 0 : i64, tpu.core_type = #tpu.core_type<tc>} {
    %c0 = arith.constant 0 : index
    %c0_0 = arith.constant 0 : index
    %0 = vector.load %arg5[%c0, %c0_0] : memref<4x128xf32, #tpu.memory_space<vmem>>, vector<1x128xf32>
    %c1 = arith.constant 1 : index
    %c0_1 = arith.constant 0 : index
    %1 = vector.load %arg5[%c1, %c0_1] : memref<4x128xf32, #tpu.memory_space<vmem>>, vector<1x128xf32>
    %c2 = arith.constant 2 : index
    %c0_2 = arith.constant 0 : index
    %2 = vector.load %arg5[%c2, %c0_2] : memref<4x128xf32, #tpu.memory_space<vmem>>, vector<1x128xf32>
    %c3 = arith.constant 3 : index
    %c0_3 = arith.constant 0 : index
    %3 = vector.load %arg5[%c3, %c0_3] : memref<4x128xf32, #tpu.memory_space<vmem>>, vector<1x128xf32>
    %4 = tpu.iota {dimensions = array<i32: 0>} : vector<64x1xi32>
    %c32_i32 = arith.constant 32 : i32
    %c0_i32 = arith.constant 0 : i32
    %5 = arith.cmpi eq, %c32_i32, %c0_i32 : i32
    %c1_i32 = arith.constant 1 : i32
    %6 = arith.select %5, %c1_i32, %c32_i32 : i32
    %7 = vector.broadcast %6 : i32 to vector<64x1xi32>
    %8 = arith.remsi %4, %7 : vector<64x1xi32>
    %c0_i32_4 = arith.constant 0 : i32
    %9 = vector.broadcast %c0_i32_4 : i32 to vector<64x1xi32>
    %10 = arith.cmpi ne, %8, %9 : vector<64x1xi32>
    %c0_i32_5 = arith.constant 0 : i32
    %11 = vector.broadcast %c0_i32_5 : i32 to vector<64x1xi32>
    %12 = arith.cmpi slt, %8, %11 : vector<64x1xi32>
    %c0_i32_6 = arith.constant 0 : i32
    %13 = arith.cmpi slt, %6, %c0_i32_6 : i32
    %14 = vector.broadcast %13 : i1 to vector<64x1xi1>
    %15 = vector.broadcast %14 : vector<64x1xi1> to vector<64x1xi1>
    %16 = arith.xori %12, %15 : vector<64x1xi1>
    %17 = arith.andi %16, %10 : vector<64x1xi1>
    %18 = vector.broadcast %6 : i32 to vector<64x1xi32>
    %19 = arith.addi %8, %18 : vector<64x1xi32>
    %20 = arith.select %17, %19, %8 : vector<64x1xi1>, vector<64x1xi32>
    %c0_i32_7 = arith.constant 0 : i32
    %21 = vector.broadcast %c0_i32_7 : i32 to vector<64x1xi32>
    %22 = arith.cmpi ne, %20, %21 : vector<64x1xi32>
    %23 = vector.shape_cast %22 : vector<64x1xi1> to vector<64x1xi1>
    %24 = vector.broadcast %23 : vector<64x1xi1> to vector<64x128xi1>
    %c32_i32_8 = arith.constant 32 : i32
    %c0_i32_9 = arith.constant 0 : i32
    %25 = arith.cmpi eq, %c32_i32_8, %c0_i32_9 : i32
    %c1_i32_10 = arith.constant 1 : i32
    %26 = arith.select %25, %c1_i32_10, %c32_i32_8 : i32
    %27 = vector.broadcast %26 : i32 to vector<64x1xi32>
    %28 = arith.remsi %4, %27 : vector<64x1xi32>
    %c0_i32_11 = arith.constant 0 : i32
    %29 = vector.broadcast %c0_i32_11 : i32 to vector<64x1xi32>
    %30 = arith.cmpi ne, %28, %29 : vector<64x1xi32>
    %c0_i32_12 = arith.constant 0 : i32
    %31 = vector.broadcast %c0_i32_12 : i32 to vector<64x1xi32>
    %32 = arith.cmpi slt, %28, %31 : vector<64x1xi32>
    %c0_i32_13 = arith.constant 0 : i32
    %33 = arith.cmpi slt, %26, %c0_i32_13 : i32
    %34 = vector.broadcast %33 : i1 to vector<64x1xi1>
    %35 = vector.broadcast %34 : vector<64x1xi1> to vector<64x1xi1>
    %36 = arith.xori %32, %35 : vector<64x1xi1>
    %37 = arith.andi %36, %30 : vector<64x1xi1>
    %38 = vector.broadcast %26 : i32 to vector<64x1xi32>
    %39 = arith.addi %28, %38 : vector<64x1xi32>
    %40 = arith.select %37, %39, %28 : vector<64x1xi1>, vector<64x1xi32>
    %c31_i32 = arith.constant 31 : i32
    %41 = vector.broadcast %c31_i32 : i32 to vector<64x1xi32>
    %42 = arith.cmpi ne, %40, %41 : vector<64x1xi32>
    %43 = vector.shape_cast %42 : vector<64x1xi1> to vector<64x1xi1>
    %44 = vector.broadcast %43 : vector<64x1xi1> to vector<64x128xi1>
    %c0_14 = arith.constant 0 : index
    %c0_15 = arith.constant 0 : index
    %45 = vector.load %arg0[%c0_14, %c0_15] : memref<64x16xbf16, #tpu.memory_space<vmem>>, vector<64x16xbf16>
    %c0_16 = arith.constant 0 : index
    %c0_17 = arith.constant 0 : index
    %46 = vector.load %arg1[%c0_16, %c0_17] : memref<16x128xbf16, #tpu.memory_space<vmem>>, vector<16x128xbf16>
    %cst = arith.constant dense<0.000000e+00> : vector<64x128xf32>
    %47 = tpu.matmul %45, %46, %cst {dimension_numbers = #tpu.dot_dimension_numbers<[1], [0], [0], [1], [0, 0, 1, 1], [], []>} : vector<64x16xbf16>, vector<16x128xbf16>, vector<64x128xf32> -> vector<64x128xf32>
    %48 = vector.broadcast %0 : vector<1x128xf32> to vector<64x128xf32>
    %49 = arith.addf %47, %48 : vector<64x128xf32>
    %cst_18 = arith.constant 0.000000e+00 : f32
    %50 = vector.broadcast %cst_18 : f32 to vector<64x128xf32>
    %51 = arith.maximumf %49, %50 : vector<64x128xf32>
    %c1_i32_19 = arith.constant 1 : i32
    %52 = tpu.dynamic_rotate %51 by %c1_i32_19 dim 0 : vector<64x128xf32>, i32 -> vector<64x128xf32>
    %cst_20 = arith.constant 0.000000e+00 : f32
    %53 = vector.broadcast %cst_20 : f32 to vector<64x128xf32>
    %54 = arith.select %24, %52, %53 : vector<64x128xi1>, vector<64x128xf32>
    %c63_i32 = arith.constant 63 : i32
    %55 = tpu.dynamic_rotate %51 by %c63_i32 dim 0 : vector<64x128xf32>, i32 -> vector<64x128xf32>
    %cst_21 = arith.constant 0.000000e+00 : f32
    %56 = vector.broadcast %cst_21 : f32 to vector<64x128xf32>
    %57 = arith.select %44, %55, %56 : vector<64x128xi1>, vector<64x128xf32>
    %58 = tpu.concatenate %54, %51, %57 in 1 : vector<64x128xf32>, vector<64x128xf32>, vector<64x128xf32> -> vector<64x384xf32>
    %59 = arith.truncf %58 : vector<64x384xf32> to vector<64x384xbf16>
    %c0_22 = arith.constant 0 : index
    %c0_23 = arith.constant 0 : index
    %60 = vector.load %arg2[%c0_22, %c0_23] : memref<384x128xbf16, #tpu.memory_space<vmem>>, vector<384x128xbf16>
    %cst_24 = arith.constant dense<0.000000e+00> : vector<64x128xf32>
    %61 = tpu.matmul %59, %60, %cst_24 {dimension_numbers = #tpu.dot_dimension_numbers<[1], [0], [0], [1], [0, 0, 1, 1], [], []>} : vector<64x384xbf16>, vector<384x128xbf16>, vector<64x128xf32> -> vector<64x128xf32>
    %62 = vector.broadcast %1 : vector<1x128xf32> to vector<64x128xf32>
    %63 = arith.addf %61, %62 : vector<64x128xf32>
    %cst_25 = arith.constant 0.000000e+00 : f32
    %64 = vector.broadcast %cst_25 : f32 to vector<64x128xf32>
    %65 = arith.maximumf %63, %64 : vector<64x128xf32>
    %c1_i32_26 = arith.constant 1 : i32
    %66 = tpu.dynamic_rotate %65 by %c1_i32_26 dim 0 : vector<64x128xf32>, i32 -> vector<64x128xf32>
    %cst_27 = arith.constant 0.000000e+00 : f32
    %67 = vector.broadcast %cst_27 : f32 to vector<64x128xf32>
    %68 = arith.select %24, %66, %67 : vector<64x128xi1>, vector<64x128xf32>
    %c63_i32_28 = arith.constant 63 : i32
    %69 = tpu.dynamic_rotate %65 by %c63_i32_28 dim 0 : vector<64x128xf32>, i32 -> vector<64x128xf32>
    %cst_29 = arith.constant 0.000000e+00 : f32
    %70 = vector.broadcast %cst_29 : f32 to vector<64x128xf32>
    %71 = arith.select %44, %69, %70 : vector<64x128xi1>, vector<64x128xf32>
    %72 = tpu.concatenate %68, %65, %71 in 1 : vector<64x128xf32>, vector<64x128xf32>, vector<64x128xf32> -> vector<64x384xf32>
    %73 = arith.truncf %72 : vector<64x384xf32> to vector<64x384xbf16>
    %c0_30 = arith.constant 0 : index
    %c0_31 = arith.constant 0 : index
    %74 = vector.load %arg3[%c0_30, %c0_31] : memref<384x128xbf16, #tpu.memory_space<vmem>>, vector<384x128xbf16>
    %cst_32 = arith.constant dense<0.000000e+00> : vector<64x128xf32>
    %75 = tpu.matmul %73, %74, %cst_32 {dimension_numbers = #tpu.dot_dimension_numbers<[1], [0], [0], [1], [0, 0, 1, 1], [], []>} : vector<64x384xbf16>, vector<384x128xbf16>, vector<64x128xf32> -> vector<64x128xf32>
    %76 = vector.broadcast %2 : vector<1x128xf32> to vector<64x128xf32>
    %77 = arith.addf %75, %76 : vector<64x128xf32>
    %cst_33 = arith.constant 0.000000e+00 : f32
    %78 = vector.broadcast %cst_33 : f32 to vector<64x128xf32>
    %79 = arith.maximumf %77, %78 : vector<64x128xf32>
    %c1_i32_34 = arith.constant 1 : i32
    %80 = tpu.dynamic_rotate %79 by %c1_i32_34 dim 0 : vector<64x128xf32>, i32 -> vector<64x128xf32>
    %cst_35 = arith.constant 0.000000e+00 : f32
    %81 = vector.broadcast %cst_35 : f32 to vector<64x128xf32>
    %82 = arith.select %24, %80, %81 : vector<64x128xi1>, vector<64x128xf32>
    %c63_i32_36 = arith.constant 63 : i32
    %83 = tpu.dynamic_rotate %79 by %c63_i32_36 dim 0 : vector<64x128xf32>, i32 -> vector<64x128xf32>
    %cst_37 = arith.constant 0.000000e+00 : f32
    %84 = vector.broadcast %cst_37 : f32 to vector<64x128xf32>
    %85 = arith.select %44, %83, %84 : vector<64x128xi1>, vector<64x128xf32>
    %86 = tpu.concatenate %82, %79, %85 in 1 : vector<64x128xf32>, vector<64x128xf32>, vector<64x128xf32> -> vector<64x384xf32>
    %87 = arith.truncf %86 : vector<64x384xf32> to vector<64x384xbf16>
    %c0_38 = arith.constant 0 : index
    %c0_39 = arith.constant 0 : index
    %88 = vector.load %arg4[%c0_38, %c0_39] : memref<384x128xbf16, #tpu.memory_space<vmem>>, vector<384x128xbf16>
    %cst_40 = arith.constant dense<0.000000e+00> : vector<64x128xf32>
    %89 = tpu.matmul %87, %88, %cst_40 {dimension_numbers = #tpu.dot_dimension_numbers<[1], [0], [0], [1], [0, 0, 1, 1], [], []>} : vector<64x384xbf16>, vector<384x128xbf16>, vector<64x128xf32> -> vector<64x128xf32>
    %90 = vector.broadcast %3 : vector<1x128xf32> to vector<64x128xf32>
    %91 = arith.addf %89, %90 : vector<64x128xf32>
    %cst_41 = arith.constant 0.000000e+00 : f32
    %92 = vector.broadcast %cst_41 : f32 to vector<64x128xf32>
    %93 = arith.maximumf %91, %92 : vector<64x128xf32>
    %94 = tpu.iota {dimensions = array<i32: 1>} : vector<1x128xi32>
    %c32_i32_42 = arith.constant 32 : i32
    %95 = vector.broadcast %c32_i32_42 : i32 to vector<1x128xi32>
    %96 = arith.cmpi sge, %94, %95 : vector<1x128xi32>
    %c112_i32 = arith.constant 112 : i32
    %97 = vector.broadcast %c112_i32 : i32 to vector<1x128xi32>
    %98 = arith.cmpi slt, %94, %97 : vector<1x128xi32>
    %99 = arith.andi %96, %98 : vector<1x128xi1>
    %100 = vector.shape_cast %99 : vector<1x128xi1> to vector<1x128xi1>
    %101 = vector.broadcast %100 : vector<1x128xi1> to vector<64x128xi1>
    %102 = arith.select %101, %65, %51 : vector<64x128xi1>, vector<64x128xf32>
    %c64_i32 = arith.constant 64 : i32
    %103 = vector.broadcast %c64_i32 : i32 to vector<1x128xi32>
    %104 = arith.cmpi sge, %94, %103 : vector<1x128xi32>
    %c112_i32_43 = arith.constant 112 : i32
    %105 = vector.broadcast %c112_i32_43 : i32 to vector<1x128xi32>
    %106 = arith.cmpi slt, %94, %105 : vector<1x128xi32>
    %107 = arith.andi %104, %106 : vector<1x128xi1>
    %108 = vector.shape_cast %107 : vector<1x128xi1> to vector<1x128xi1>
    %109 = vector.broadcast %108 : vector<1x128xi1> to vector<64x128xi1>
    %110 = arith.select %109, %79, %102 : vector<64x128xi1>, vector<64x128xf32>
    %c96_i32 = arith.constant 96 : i32
    %111 = vector.broadcast %c96_i32 : i32 to vector<1x128xi32>
    %112 = arith.cmpi sge, %94, %111 : vector<1x128xi32>
    %c112_i32_44 = arith.constant 112 : i32
    %113 = vector.broadcast %c112_i32_44 : i32 to vector<1x128xi32>
    %114 = arith.cmpi slt, %94, %113 : vector<1x128xi32>
    %115 = arith.andi %112, %114 : vector<1x128xi1>
    %116 = vector.shape_cast %115 : vector<1x128xi1> to vector<1x128xi1>
    %117 = vector.broadcast %116 : vector<1x128xi1> to vector<64x128xi1>
    %118 = arith.select %117, %93, %110 : vector<64x128xi1>, vector<64x128xf32>
    %c0_45 = arith.constant 0 : index
    %c0_46 = arith.constant 0 : index
    %119 = vector.load %arg6[%c0_45, %c0_46] : memref<64x128xf32, #tpu.memory_space<vmem>>, vector<64x128xf32>
    tpu.vector_store %arg6[%c0_45, %c0_46], %118 {strides = array<i32>} : memref<64x128xf32, #tpu.memory_space<vmem>>, vector<64x128xf32>,
    return
  }
}

</mosaic_0001>

<bundles_post_ra>
// kernel: tpu_custom_call.1
= control target key start
LH: loop header
LB: loop body
LE: loop exit
PB: predicated region body
PF: predicated region fallthrough
CT: control target
= control target key end

     0   :  { %11 = vsyncpa [#allocation3], 0  ;;  %s2487_s0 = inlined_call_operand.vmem [shape: bf16[64,16], index: 0, kind: input, shape index: {}]   ;;  %s2488_s1 = inlined_call_operand.vmem [shape: bf16[16,128], index: 1, kind: input, shape index: {}]   ;;  %s2489_s2 = inlined_call_operand.hbm [shape: bf16[384,128], index: 2, kind: input, shape index: {}]   ;;  %s2490_s3 = inlined_call_operand.hbm [shape: bf16[384,128], index: 3, kind: input, shape index: {}]   ;;  %s2491_s4 = inlined_call_operand.hbm [shape: bf16[384,128], index: 4, kind: input, shape index: {}]   ;;  %s2492_s5 = inlined_call_operand.vmem [shape: f32[4,128], index: 5, kind: input, shape index: {}]   ;;  %s2493_s6 = inlined_call_operand.hbm [shape: f32[64,128], index: 6, kind: output, shape index: {}]  }
   0x1   :  { %12 = vsyncpa [#allocation6], 0 }
   0x2   :  { %13 = vsyncpa [#allocation4], 0  ;;  %s35_s23 = sshll.u32 %s2490_s3, 4  ;;  %s1978_s24 = smov [#allocation5]   ;;  %s36_s23 = int_to_ptr.hbm [resolvable:$true] %s35_s23 }
   0x3   :  { %s37_s25 = sshll.u32 %s1978_s24, 4  ;;  %s22_s28 = sshll.u32 %s2489_s2, 4  ;;  %s38_s25 = int_to_ptr.vmem [resolvable:$true] %s37_s25  ;;  %s23_s28 = int_to_ptr.hbm [resolvable:$true] %s22_s28 }
   0x4   :  { %s1979_s29 = smov 64   ;;  %s1980_s30 = smov 4  }
   0x5   :  { %43 = dma.hbm_to_vmem [thread:$0]  %s36_s23, 3072, %s38_s25, [#allocation6], %s1979_s29, %s1979_s29, %s1980_s30  }
   0x6   :  { %s1981_s7 = smov [#allocation2]   ;;  %s48_s11 = sshll.u32 %s2491_s4, 4  ;;  %s49_s11 = int_to_ptr.hbm [resolvable:$true] %s48_s11 }
   0x7   :  { %s24_s8 = sshll.u32 %s1981_s7, 4  ;;  %s1982_s3 = smov [#allocation7]   ;;  %s25_s8 = int_to_ptr.vmem [resolvable:$true] %s24_s8 }
   0x8   :  { %30 = dma.hbm_to_vmem [thread:$0]  %s23_s28, 3072, %s25_s8, [#allocation3], %s1979_s29, %s1979_s29, %s1980_s30  }
   0x9   :  { %s50_s12 = sshll.u32 %s1982_s3, 4  ;;  %s51_s12 = int_to_ptr.vmem [resolvable:$true] %s50_s12 }
   0xa   :  { %56 = dma.hbm_to_vmem [thread:$0]  %s49_s11, 3072, %s51_s12, [#allocation6], %s1979_s29, %s1979_s29, %s1980_s30  }
   0xb   :  { %1972 = dma.done.wait [#allocation3], 3072  }
   0xc   :  { %1973 = vsyncadd [#allocation3], 4294964224 }
   0xd   :  { %1974 = dma.done.wait [#allocation6], 6144  }
   0xe   :  { %1975 = vsyncadd [#allocation6], 4294961152  ;;  %v1781_v0 = vld [vmem:[%s2488_s1] sm:$0xff]  ;;  %v1779_v2 = vld [vmem:[%s2487_s0 + $0x10] sm:$0xff]  ;;  %vm266_vm0 = vcmask 130048   ;;  %v76_v30 = vlaneseq  ;;  %vm1983_vm4 = vmmov 1  }
   0xf   :  { %v1777_v1 = vld [vmem:[%s2487_s0] sm:$0xff]  ;;  %v1805_v3 = vld [vmem:[#allocation2 + $0xb8] sm:$0xff]  ;;  %286 = vmatpush.bf16.msra.mxu0 %v1781_v0  ;;  %1854 = vmatpush.bf16.msra.mxu3 %v1781_v0  ;;  %v1804_v4 = vld [vmem:[#allocation2 + $0xb0] sm:$0xff]  ;;  %s1415_s30 = sshll.u32 %s2493_s6, 4  ;;  %s1985_s7 = smov 128   ;;  %s1416_s30 = int_to_ptr.hbm [resolvable:$true] %s1415_s30 }
  0x10   :  { %v1778_v5 = vld [vmem:[%s2487_s0 + $0x8] sm:$0xff]  ;;  %v1780_v6 = vld [vmem:[%s2487_s0 + $0x18] sm:$0xff]  ;;  %v1788_v9 = vld [vmem:[#allocation2 + $0x30] sm:$0xff]  ;;  %v2052_v35 = vshrl.u32 %v76_v30, 7  ;;  %s1986_s8 = smov 8  }
  0x11   :  { %v1789_v7 = vld [vmem:[#allocation2 + $0x38] sm:$0xff]  ;;  %v1803_v8 = vld [vmem:[#allocation2 + $0xa8] sm:$0xff]  ;;  %v1802_v10 = vld [vmem:[#allocation2 + $0xa0] sm:$0xff] }
  0x12   :  { %1449 = vmatmul.msk.bf16.vlgmr.msra.gmra.mxu0 %vm266_vm0, %v1777_v1  ;;  %1451 = vmatmul.msk.bf16.vlgmr.msra.gmra.mxu3 %vm266_vm0, %v1779_v2  ;;  %v1787_v11 = vld [vmem:[#allocation2 + $0x28] sm:$0xff]  ;;  %v1801_v12 = vld [vmem:[#allocation2 + $0x98] sm:$0xff]  ;;  %v1786_v13 = vld [vmem:[#allocation2 + $0x20] sm:$0xff]  ;;  %vm349_vm1 = vcmp.lt.s32.totalorder %v2052_v35, 7  ;;  %v81_v44 = vadd.s32 32, %v2052_v35  ;;  %v80_v61 = vadd.s32 24, %v2052_v35 }
  0x13   :  { %629 = vmatpush.bf16.msrb.mxu3 %v1805_v3  ;;  %1855 = vmatpush.bf16.msra.mxu2 %v1789_v7  ;;  %v1800_v14 = vld [vmem:[#allocation2 + $0x90] sm:$0xff]  ;;  %v1785_v15 = vld [vmem:[#allocation2 + $0x18] sm:$0xff]  ;;  %v1799_v16 = vld [vmem:[#allocation2 + $0x88] sm:$0xff]  ;;  %vm324_vm3 = vcmp.lt.s32.totalorder %v2052_v35, 1  ;;  %v89_v0 = vand.u32 31, %v2052_v35 }
  0x14   :  { %571 = vmatpush.bf16.msra.mxu1 %v1789_v7  ;;  %v1784_v17 = vld [vmem:[#allocation2 + $0x10] sm:$0xff]  ;;  %v1798_v18 = vld [vmem:[#allocation2 + $0x80] sm:$0xff]  ;;  %v1783_v19 = vld [vmem:[#allocation2 + $0x8] sm:$0xff]  ;;  %v117_v54 = vand.u32 31, %v81_v44 }
  0x15   :  { %v1782_v20 = vld [vmem:[#allocation2] sm:$0xff]  ;;  %v1797_v22 = vld [vmem:[#allocation2 + $0x78] sm:$0xff]  ;;  %v1796_v23 = vld [vmem:[#allocation2 + $0x70] sm:$0xff]  ;;  %vm181_vm6 = vcmp.ne.s32.totalorder %v89_v0, 0 }
  0x16   :  { %v1795_v26 = vld [vmem:[#allocation2 + $0x68] sm:$0xff]  ;;  %v1872_v27 = vld [vmem:[%s2492_s5] ss:$0 sm:$0xff]  ;;  %v1793_v38 = vld [vmem:[#allocation2 + $0x58] sm:$0xff]  ;;  %vm185_vm2 = vcmp.ne.s32.totalorder %v117_v54, 0 }
  0x17   :  { %630 = vmatpush.bf16.msrb.mxu3 %v1804_v4  ;;  %1856 = vmatpush.bf16.msra.mxu2 %v1788_v9  ;;  %v1794_v29 = vld [vmem:[#allocation2 + $0x60] sm:$0xff]  ;;  %v1792_v43 = vld [vmem:[#allocation2 + $0x50] sm:$0xff]  ;;  %v1791_v55 = vld [vmem:[#allocation2 + $0x48] sm:$0xff] }
  0x18   :  { %572 = vmatpush.bf16.msra.mxu1 %v1788_v9  ;;  %v1790_v60 = vld [vmem:[#allocation2 + $0x40] sm:$0xff]  ;;  %vm2086_vm5 = vmpackc.low %vm1983_vm4, %vm185_vm2  ;;  %v1821_v54 = vld [vmem:[#allocation5 + $0x78] sm:$0xff] }
  0x19   :  { %vm2104_vm8 = vmpackc.low %vm1983_vm4, %vm181_vm6  ;;  %v1816_v0 = vld [vmem:[#allocation5 + $0x50] sm:$0xff] }
  0x1b   :  { %631 = vmatpush.bf16.msrb.mxu3 %v1803_v8  ;;  %1857 = vmatpush.bf16.msra.mxu2 %v1787_v11 }
  0x1c   :  { %573 = vmatpush.bf16.msra.mxu1 %v1787_v11 }
  0x1f   :  { %632 = vmatpush.bf16.msrb.mxu3 %v1802_v10  ;;  %1858 = vmatpush.bf16.msra.mxu2 %v1786_v13 }
  0x20   :  { %574 = vmatpush.bf16.msra.mxu1 %v1786_v13 }
  0x22   :  { %1450 = vmatmul.msk.bf16.gmra.mxu0 %vm266_vm0, %v1778_v5  ;;  %1452 = vmatmul.msk.bf16.gmra.mxu3 %vm266_vm0, %v1780_v6  ;;  %v110_v6 = vand.u32 31, %v80_v61  ;;  %v1828_v61 = vld [vmem:[#allocation5 + $0xb0] sm:$0xff] }
  0x23   :  { %633 = vmatpush.bf16.msrb.mxu3 %v1801_v12  ;;  %1859 = vmatpush.bf16.msra.mxu2 %v1785_v15 }
  0x24   :  { %575 = vmatpush.bf16.msra.mxu1 %v1785_v15  ;;  %vm208_vm7 = vcmp.ne.s32.totalorder %v110_v6, 31  ;;  %v1814_v6 = vld [vmem:[#allocation5 + $0x40] sm:$0xff] }
  0x25   :  { %vm2115_vm9 = vmpackc.low %vm208_vm7, %vm1983_vm4 }
  0x27   :  { %634 = vmatpush.bf16.msrb.mxu3 %v1800_v14  ;;  %1860 = vmatpush.bf16.msra.mxu2 %v1784_v17 }
  0x28   :  { %576 = vmatpush.bf16.msra.mxu1 %v1784_v17 }
  0x2b   :  { %635 = vmatpush.bf16.msrb.mxu3 %v1799_v16  ;;  %1861 = vmatpush.bf16.msra.mxu2 %v1783_v19 }
  0x2c   :  { %577 = vmatpush.bf16.msra.mxu1 %v1783_v19 }
  0x2f   :  { %636 = vmatpush.bf16.msrb.mxu3 %v1798_v18  ;;  %1862 = vmatpush.bf16.msra.mxu2 %v1782_v20 }
  0x30   :  { %578 = vmatpush.bf16.msra.mxu1 %v1782_v20 }
  0x33   :  { %600 = vmatpush.bf16.msrb.mxu2 %v1797_v22 }
  0x34   :  { %948 = vmatpush.bf16.msrb.mxu1 %v1821_v54 }
  0x37   :  { %601 = vmatpush.bf16.msrb.mxu2 %v1796_v23 }
  0x3b   :  { %602 = vmatpush.bf16.msrb.mxu2 %v1795_v26 }
  0x3f   :  { %603 = vmatpush.bf16.msrb.mxu2 %v1794_v29 }
  0x43   :  { %604 = vmatpush.bf16.msrb.mxu2 %v1793_v38 }
  0x47   :  { %605 = vmatpush.bf16.msrb.mxu2 %v1792_v43 }
  0x4b   :  { %606 = vmatpush.bf16.msrb.mxu2 %v1791_v55  ;;  %v1820_v55 = vld [vmem:[#allocation5 + $0x70] sm:$0xff] }
  0x4c   :  { %949 = vmatpush.bf16.msrb.mxu1 %v1820_v55 }
  0x4f   :  { %607 = vmatpush.bf16.msrb.mxu2 %v1790_v60 }
  0x8f   :  { %v288_v21 = vpop.f32.mrf.mxu0 }
  0x90   :  { %v289_v31 = vadd.f32 %v1872_v27, %v288_v21 }
  0x92   :  { %v2054_v36 = vmax.f32 %v289_v31, 0.0 }
  0x94   :  { %v341_v45 = vrot.slane %v2054_v36, 1  ;;  %v316_v10 = vrot.slane %v2054_v36, 7 }
  0x95   :  { %v298_v24 = vpop.f32.mrf.mxu3 }
  0x96   :  { %v299_v39 = vadd.f32 %v1872_v27, %v298_v24 }
  0x97   :  { %v290_v25 = vpop.f32.mrf.mxu0 }
  0x98   :  { %v291_v28 = vadd.f32 %v1872_v27, %v290_v25  ;;  %v2063_v48 = vmax.f32 %v299_v39, 0.0 }
  0x9a   :  { %v2049_v33 = vmax.f32 %v291_v28, 0.0  ;;  %v320_v57 = vrot.slane %v2063_v48, 7  ;;  %v345_v11 = vrot.slane %v2063_v48, 1 }
  0x9c   :  { %v342_v40 = vrot.slane %v2049_v33, 1  ;;  %v317_v7 = vrot.slane %v2049_v33, 7 }
  0x9d   :  { %v300_v32 = vpop.f32.mrf.mxu3 }
  0x9e   :  { %v301_v41 = vadd.f32 %v1872_v27, %v300_v32  ;;  %v356_v51 = vsel %vm349_vm1, %v341_v45, %v342_v40  ;;  %v331_v14 = vsel %vm324_vm3, %v316_v10, %v317_v7 }
  0x9f   :  { %v293_v34 = vpop.f32.mrf.mxu0 }
  0xa0   :  { %v294_v37 = vadd.f32 %v1872_v27, %v293_v34  ;;  %v2065_v49 = vmax.f32 %v301_v41, 0.0  ;;  %v367_v41 = vpack.c.bf16 %v2049_v33, %v2054_v36 }
  0xa2   :  { %v2057_v42 = vmax.f32 %v294_v37, 0.0  ;;  %v321_v58 = vrot.slane %v2065_v49, 7  ;;  %v346_v31 = vrot.slane %v2065_v49, 1 }
  0xa4   :  { %v343_v46 = vrot.slane %v2057_v42, 1  ;;  %v327_v2 = vsel %vm324_vm3, %v320_v57, %v321_v58  ;;  %v352_v38 = vsel %vm349_vm1, %v345_v11, %v346_v31 }
  0xa5   :  { %v303_v47 = vpop.f32.mrf.mxu3 }
  0xa6   :  { %v355_v50 = vsel %vm349_vm1, %v342_v40, %v343_v46  ;;  %v304_v12 = vadd.f32 %v1872_v27, %v303_v47  ;;  %v84_v40 = vadd.s32 56, %v2052_v35 }
  0xa7   :  { %v295_v52 = vpop.f32.mrf.mxu0  ;;  %v368_v53 = vpack.c.bf16 %v355_v50, %v356_v51 }
  0xa8   :  { %v296_v56 = vadd.f32 %v1872_v27, %v295_v52  ;;  %v2112_v20 = vmax.f32 %v304_v12, 0.0  ;;  %v138_v43 = vand.u32 31, %v84_v40 }
  0xa9   :  { %637 = vmatmul.bf16.vlgmr.msrb.gmra.mxu3 %v368_v53  ;;  %v373_v53 = vpack.c.bf16 %v2065_v49, %v2063_v48 }
  0xaa   :  { %v2075_v59 = vmax.f32 %v296_v56, 0.0  ;;  %v322_v23 = vrot.slane %v2112_v20, 7  ;;  %v347_v28 = vrot.slane %v2112_v20, 1  ;;  %vm212_vm10 = vcmp.ne.s32.totalorder %v138_v43, 31  ;;  %v1819_v56 = vld [vmem:[#allocation5 + $0x68] sm:$0xff] }
  0xab   :  { %vm2150_vm11 = vmpackc.low %vm212_vm10, %vm1983_vm4  ;;  %950 = vmatpush.bf16.msrb.mxu1 %v1819_v56 }
  0xac   :  { %v319_v62 = vrot.slane %v2075_v59, 7  ;;  %v344_v8 = vrot.slane %v2075_v59, 1  ;;  %v326_v25 = vsel %vm324_vm3, %v321_v58, %v322_v23  ;;  %v351_v34 = vsel %vm349_vm1, %v346_v31, %v347_v28  ;;  %v1818_v58 = vld [vmem:[#allocation5 + $0x60] sm:$0xff] }
  0xad   :  { %v305_v63 = vpop.f32.mrf.mxu3  ;;  %v374_v39 = vpack.c.bf16 %v351_v34, %v352_v38  ;;  %v370_v52 = vpack.c.bf16 %v2075_v59, %v2057_v42 }
  0xae   :  { %v306_v1 = vadd.f32 %v1872_v27, %v305_v63  ;;  %v328_v3 = vsel %vm324_vm3, %v319_v62, %v320_v57  ;;  %v353_v17 = vsel %vm349_vm1, %v344_v8, %v345_v11  ;;  %v354_v18 = vsel %vm349_vm1, %v343_v46, %v344_v8  ;;  %v1829_v57 = vld [vmem:[#allocation5 + $0xb8] sm:$0xff]  ;;  %v1827_v63 = vld [vmem:[#allocation5 + $0xa8] sm:$0xff]  ;;  %v1824_v8 = vld [vmem:[#allocation5 + $0x90] sm:$0xff] }
  0xaf   :  { %v1553_v5 = vpack.c.bf16 %v327_v2, %v328_v3  ;;  %v1556_v22 = vpack.c.bf16 %v353_v17, %v354_v18  ;;  %v318_v27 = vrot.slane %v2057_v42, 7  ;;  %951 = vmatpush.bf16.msrb.mxu1 %v1818_v58  ;;  %v1826_v2 = vld [vmem:[#allocation5 + $0xa0] sm:$0xff]  ;;  %v1815_v3 = vld [vmem:[#allocation5 + $0x48] sm:$0xff] }
  0xb0   :  { %v2092_v9 = vmax.f32 %v306_v1, 0.0  ;;  %v1823_v11 = vld [vmem:[#allocation5 + $0x88] sm:$0xff]  ;;  %v2173_v17 = vld [vmem:[%s2492_s5 + $0x1] ss:$0 sm:$0xff] }
  0xb1   :  { %1554 = vmatmul.msk.bf16.vlgmr.msra.gmra.mxu2 %vm2086_vm5, %v1553_v5  ;;  %v329_v29 = vsel %vm324_vm3, %v318_v27, %v319_v62  ;;  %v330_v32 = vsel %vm324_vm3, %v317_v7, %v318_v27  ;;  %v1817_v62 = vld [vmem:[#allocation5 + $0x58] sm:$0xff] }
  0xb2   :  { %v323_v13 = vrot.slane %v2092_v9, 7  ;;  %v369_v37 = vpack.c.bf16 %v329_v29, %v330_v32  ;;  %v348_v44 = vrot.slane %v2092_v9, 1  ;;  %977 = vmatpush.bf16.msra.mxu2 %v1829_v57  ;;  %v1825_v5 = vld [vmem:[#allocation5 + $0x98] sm:$0xff] }
  0xb3   :  { %952 = vmatpush.bf16.msrb.mxu1 %v1817_v62 }
  0xb4   :  { %v332_v15 = vsel %vm324_vm3, %v323_v13, %v316_v10  ;;  %v325_v24 = vsel %vm324_vm3, %v322_v23, %v323_v13  ;;  %v350_v46 = vsel %vm349_vm1, %v347_v28, %v348_v44  ;;  %v357_v47 = vsel %vm349_vm1, %v348_v44, %v341_v45  ;;  %v1813_v23 = vld [vmem:[#allocation5 + $0x38] sm:$0xff]  ;;  %v1812_v28 = vld [vmem:[#allocation5 + $0x30] sm:$0xff]  ;;  %v1810_v44 = vld [vmem:[#allocation5 + $0x20] sm:$0xff] }
  0xb5   :  { %v1550_v19 = vpack.c.bf16 %v331_v14, %v332_v15  ;;  %v375_v26 = vpack.c.bf16 %v325_v24, %v326_v25  ;;  %v1559_v51 = vpack.c.bf16 %v357_v47, %v350_v46  ;;  %v376_v45 = vpack.c.bf16 %v2092_v9, %v2112_v20  ;;  %v1822_v14 = vld [vmem:[#allocation5 + $0x80] sm:$0xff]  ;;  %919 = vmatpush.bf16.msrb.mxu0 %v1813_v23 }
  0xb6   :  { %978 = vmatpush.bf16.msra.mxu2 %v1828_v61  ;;  %v1808_v61 = vld [vmem:[#allocation5 + $0x10] sm:$0xff] }
  0xb7   :  { %1551 = vmatmul.msk.bf16.vlgmr.msra.gmra.mxu1 %vm2104_vm8, %v1550_v19 }
  0xb8   :  { %953 = vmatpush.bf16.msrb.mxu1 %v1816_v0 }
  0xb9   :  { %1557 = vmatmul.msk.bf16.gmra.mxu3 %vm2115_vm9, %v1556_v22  ;;  %920 = vmatpush.bf16.msrb.mxu0 %v1812_v28 }
  0xba   :  { %979 = vmatpush.bf16.msra.mxu2 %v1827_v63 }
  0xbc   :  { %954 = vmatpush.bf16.msrb.mxu1 %v1815_v3 }
  0xbe   :  { %980 = vmatpush.bf16.msra.mxu2 %v1826_v2 }
  0xc0   :  { %955 = vmatpush.bf16.msrb.mxu1 %v1814_v6  ;;  %v1807_v6 = vld [vmem:[#allocation5 + $0x8] sm:$0xff] }
  0xc1   :  { %594 = vmatmul.bf16.gmra.mxu2 %v375_v26 }
  0xc2   :  { %981 = vmatpush.bf16.msra.mxu2 %v1825_v5 }
  0xc6   :  { %982 = vmatpush.bf16.msra.mxu2 %v1824_v8 }
  0xc7   :  { %584 = vmatmul.bf16.gmra.mxu1 %v369_v37  ;;  %v1811_v37 = vld [vmem:[#allocation5 + $0x28] sm:$0xff] }
  0xc8   :  { %921 = vmatpush.bf16.msrb.mxu0 %v1811_v37 }
  0xc9   :  { %647 = vmatmul.bf16.gmra.mxu3 %v374_v39 }
  0xca   :  { %983 = vmatpush.bf16.msra.mxu2 %v1823_v11 }
  0xcc   :  { %922 = vmatpush.bf16.msrb.mxu0 %v1810_v44 }
  0xce   :  { %984 = vmatpush.bf16.msra.mxu2 %v1822_v14 }
  0xd1   :  { %608 = vmatmul.bf16.vlgmr.msrb.gmra.mxu2 %v367_v41 }
  0xd9   :  { %1560 = vmatmul.msk.bf16.gmra.mxu3 %vm2150_vm11, %v1559_v51 }
  0xe1   :  { %613 = vmatmul.bf16.gmra.mxu2 %v370_v52 }
  0xf1   :  { %618 = vmatmul.bf16.gmra.mxu2 %v373_v53  ;;  %v1809_v53 = vld [vmem:[#allocation5 + $0x18] sm:$0xff] }
  0xf2   :  { %923 = vmatpush.bf16.msrb.mxu0 %v1809_v53 }
  0xf6   :  { %924 = vmatpush.bf16.msrb.mxu0 %v1808_v61 }
  0xfa   :  { %925 = vmatpush.bf16.msrb.mxu0 %v1807_v6 }
 0x101   :  { %623 = vmatmul.bf16.gmra.mxu2 %v376_v45 }
 0x12c   :  { %v638_v10 = vpop.f32.mrf.mxu3 }
 0x134   :  { %v2162_v60 = vpop.f32.mrf.mxu2  ;;  %v580_v12 = vpop.f32.mrf.mxu1 }
 0x135   :  { %v640_v15 = vpop.f32.mrf.mxu3  ;;  %v581_v22 = vadd.f32 %v2173_v17, %v580_v12  ;;  %v1806_v12 = vld [vmem:[#allocation5] sm:$0xff] }
 0x136   :  { %926 = vmatpush.bf16.msrb.mxu0 %v1806_v12 }
 0x13c   :  { %v2164_v1 = vpop.f32.mrf.mxu2  ;;  %v582_v18 = vpop.f32.mrf.mxu1 }
 0x13d   :  { %v583_v25 = vadd.f32 %v2173_v17, %v582_v18  ;;  %v643_v26 = vpop.f32.mrf.mxu3 }
 0x144   :  { %v2166_v7 = vpop.f32.mrf.mxu2  ;;  %v585_v32 = vpop.f32.mrf.mxu1 }
 0x145   :  { %v586_v40 = vadd.f32 %v2173_v17, %v585_v32  ;;  %v645_v47 = vpop.f32.mrf.mxu3 }
 0x14c   :  { %v2168_v13 = vpop.f32.mrf.mxu2  ;;  %v587_v52 = vpop.f32.mrf.mxu1 }
 0x14d   :  { %v588_v55 = vadd.f32 %v2173_v17, %v587_v52  ;;  %v648_v5 = vpop.f32.mrf.mxu3 }
 0x154   :  { %v609_v19 = vpop.f32.mrf.mxu2 }
 0x155   :  { %v610_v24 = vadd.f32 %v609_v19, %v581_v22  ;;  %v650_v23 = vpop.f32.mrf.mxu3 }
 0x157   :  { %v639_v29 = vadd.f32 %v638_v10, %v610_v24  ;;  %v591_v10 = vadd.f32 %v2173_v17, %v2162_v60  ;;  %v593_v24 = vadd.f32 %v2173_v17, %v2164_v1  ;;  %v596_v1 = vadd.f32 %v2173_v17, %v2166_v7 }
 0x159   :  { %v2177_v38 = vmax.f32 %v639_v29, 0.0 }
 0x15b   :  { %v690_v56 = vrot.slane %v2177_v38, 1 }
 0x15c   :  { %v611_v27 = vpop.f32.mrf.mxu2 }
 0x15d   :  { %v612_v31 = vadd.f32 %v611_v27, %v583_v25  ;;  %v653_v37 = vpop.f32.mrf.mxu3 }
 0x15f   :  { %v641_v34 = vadd.f32 %v640_v15, %v612_v31 }
 0x161   :  { %v2179_v39 = vmax.f32 %v641_v34, 0.0 }
 0x163   :  { %v715_v41 = vpack.c.bf16 %v2179_v39, %v2177_v38  ;;  %v691_v45 = vrot.slane %v2179_v39, 1  ;;  %v667_v61 = vrot.slane %v2179_v39, 7 }
 0x164   :  { %v614_v43 = vpop.f32.mrf.mxu2 }
 0x165   :  { %v615_v46 = vadd.f32 %v614_v43, %v586_v40  ;;  %956 = vmatmul.bf16.vlgmr.msrb.gmra.mxu1 %v715_v41  ;;  %v704_v0 = vsel %vm349_vm1, %v690_v56, %v691_v45 }
 0x167   :  { %v644_v51 = vadd.f32 %v643_v26, %v615_v46 }
 0x169   :  { %v2185_v54 = vmax.f32 %v644_v51, 0.0 }
 0x16b   :  { %v692_v57 = vrot.slane %v2185_v54, 1 }
 0x16c   :  { %v616_v58 = vpop.f32.mrf.mxu2 }
 0x16d   :  { %v617_v62 = vadd.f32 %v616_v58, %v588_v55  ;;  %v703_v63 = vsel %vm349_vm1, %v691_v45, %v692_v57  ;;  %v655_v55 = vpop.f32.mrf.mxu3 }
 0x16e   :  { %v716_v2 = vpack.c.bf16 %v703_v63, %v704_v0 }
 0x16f   :  { %v646_v3 = vadd.f32 %v645_v47, %v617_v62  ;;  %v598_v47 = vadd.f32 %v2173_v17, %v2168_v13  ;;  %v666_v13 = vrot.slane %v2177_v38, 7 }
 0x170   :  { %985 = vmatmul.bf16.vlgmr.msra.gmra.mxu2 %v716_v2 }
 0x171   :  { %v2196_v8 = vmax.f32 %v646_v3, 0.0  ;;  %v680_v0 = vsel %vm324_vm3, %v666_v13, %v667_v61 }
 0x173   :  { %v718_v11 = vpack.c.bf16 %v2196_v8, %v2185_v54  ;;  %v693_v22 = vrot.slane %v2196_v8, 1  ;;  %v669_v12 = vrot.slane %v2196_v8, 7 }
 0x174   :  { %v619_v14 = vpop.f32.mrf.mxu2 }
 0x175   :  { %v620_v15 = vadd.f32 %v619_v14, %v591_v10  ;;  %961 = vmatmul.bf16.gmra.mxu1 %v718_v11  ;;  %v702_v28 = vsel %vm349_vm1, %v692_v57, %v693_v22  ;;  %v668_v14 = vrot.slane %v2185_v54, 7 }
 0x177   :  { %v649_v18 = vadd.f32 %v648_v5, %v620_v15  ;;  %v678_v15 = vsel %vm324_vm3, %v668_v14, %v669_v12 }
 0x179   :  { %v2202_v19 = vmax.f32 %v649_v18, 0.0  ;;  %v679_v18 = vsel %vm324_vm3, %v667_v61, %v668_v14 }
 0x17b   :  { %v694_v25 = vrot.slane %v2202_v19, 1 }
 0x17c   :  { %v621_v60 = vpop.f32.mrf.mxu2 }
 0x17d   :  { %v622_v26 = vadd.f32 %v621_v60, %v593_v24  ;;  %v701_v27 = vsel %vm349_vm1, %v693_v22, %v694_v25  ;;  %v717_v22 = vpack.c.bf16 %v678_v15, %v679_v18 }
 0x17e   :  { %v1664_v29 = vpack.c.bf16 %v701_v27, %v702_v28 }
 0x17f   :  { %v651_v31 = vadd.f32 %v650_v23, %v622_v26 }
 0x180   :  { %1665 = vmatmul.msk.bf16.gmra.mxu2 %vm2115_vm9, %v1664_v29 }
 0x181   :  { %v2214_v32 = vmax.f32 %v651_v31, 0.0  ;;  %v1845_v31 = vld [vmem:[#allocation7 + $0x78] sm:$0xff] }
 0x182   :  { %1296 = vmatpush.bf16.msra.mxu0 %v1845_v31  ;;  %v1832_v31 = vld [vmem:[#allocation7 + $0x10] sm:$0xff] }
 0x183   :  { %v721_v34 = vpack.c.bf16 %v2214_v32, %v2202_v19  ;;  %v695_v46 = vrot.slane %v2214_v32, 1  ;;  %v671_v23 = vrot.slane %v2214_v32, 7 }
 0x184   :  { %v624_v40 = vpop.f32.mrf.mxu2 }
 0x185   :  { %v625_v41 = vadd.f32 %v624_v40, %v596_v1  ;;  %966 = vmatmul.bf16.gmra.mxu1 %v721_v34  ;;  %v700_v45 = vsel %vm349_vm1, %v694_v25, %v695_v46  ;;  %v1844_v1 = vld [vmem:[#allocation7 + $0x70] sm:$0xff]  ;;  %v1843_v34 = vld [vmem:[#allocation7 + $0x68] sm:$0xff]  ;;  %v1842_v40 = vld [vmem:[#allocation7 + $0x60] sm:$0xff] }
 0x186   :  { %1297 = vmatpush.bf16.msra.mxu0 %v1844_v1 }
 0x187   :  { %v654_v43 = vadd.f32 %v653_v37, %v625_v41  ;;  %v1853_v37 = vld [vmem:[#allocation7 + $0xb8] sm:$0xff]  ;;  %v1852_v41 = vld [vmem:[#allocation7 + $0xb0] sm:$0xff] }
 0x188   :  { %1325 = vmatpush.bf16.msra.mxu1 %v1853_v37 }
 0x189   :  { %v2220_v44 = vmax.f32 %v654_v43, 0.0  ;;  %v1841_v43 = vld [vmem:[#allocation7 + $0x58] sm:$0xff] }
 0x18a   :  { %1298 = vmatpush.bf16.msra.mxu0 %v1843_v34 }
 0x18b   :  { %v696_v51 = vrot.slane %v2220_v44, 1  ;;  %v672_v26 = vrot.slane %v2220_v44, 7 }
 0x18c   :  { %v626_v52 = vpop.f32.mrf.mxu2  ;;  %1326 = vmatpush.bf16.msra.mxu1 %v1852_v41 }
 0x18d   :  { %v627_v53 = vadd.f32 %v626_v52, %v598_v47  ;;  %v699_v7 = vsel %vm349_vm1, %v695_v46, %v696_v51  ;;  %v675_v28 = vsel %vm324_vm3, %v671_v23, %v672_v26  ;;  %v1851_v46 = vld [vmem:[#allocation7 + $0xa8] sm:$0xff]  ;;  %v1840_v47 = vld [vmem:[#allocation7 + $0x50] sm:$0xff]  ;;  %v1850_v52 = vld [vmem:[#allocation7 + $0xa0] sm:$0xff] }
 0x18e   :  { %v722_v57 = vpack.c.bf16 %v699_v7, %v700_v45  ;;  %1299 = vmatpush.bf16.msra.mxu0 %v1842_v40  ;;  %v1849_v7 = vld [vmem:[#allocation7 + $0x98] sm:$0xff]  ;;  %v1838_v45 = vld [vmem:[#allocation7 + $0x40] sm:$0xff] }
 0x18f   :  { %v656_v58 = vadd.f32 %v655_v55, %v627_v53  ;;  %v1839_v53 = vld [vmem:[#allocation7 + $0x48] sm:$0xff]  ;;  %v1836_v55 = vld [vmem:[#allocation7 + $0x30] sm:$0xff] }
 0x190   :  { %995 = vmatmul.bf16.gmra.mxu2 %v722_v57  ;;  %1327 = vmatpush.bf16.msra.mxu1 %v1851_v46  ;;  %v1848_v57 = vld [vmem:[#allocation7 + $0x90] sm:$0xff] }
 0x191   :  { %v2231_v62 = vmax.f32 %v656_v58, 0.0 }
 0x192   :  { %1300 = vmatpush.bf16.msra.mxu0 %v1841_v43 }
 0x193   :  { %v673_v17 = vrot.slane %v2231_v62, 7  ;;  %v724_v63 = vpack.c.bf16 %v2231_v62, %v2220_v44  ;;  %v697_v5 = vrot.slane %v2231_v62, 1 }
 0x194   :  { %1328 = vmatpush.bf16.msra.mxu1 %v1850_v52 }
 0x195   :  { %971 = vmatmul.bf16.gmra.mxu1 %v724_v63  ;;  %v681_v2 = vsel %vm324_vm3, %v673_v17, %v666_v13  ;;  %v698_v6 = vsel %vm349_vm1, %v696_v51, %v697_v5  ;;  %v705_v10 = vsel %vm349_vm1, %v697_v5, %v690_v56  ;;  %v670_v56 = vrot.slane %v2202_v19, 7  ;;  %v1837_v51 = vld [vmem:[#allocation7 + $0x38] sm:$0xff]  ;;  %v1847_v13 = vld [vmem:[#allocation7 + $0x88] sm:$0xff]  ;;  %v1846_v63 = vld [vmem:[#allocation7 + $0x80] sm:$0xff] }
 0x196   :  { %v1658_v3 = vpack.c.bf16 %v680_v0, %v681_v2  ;;  %v1667_v11 = vpack.c.bf16 %v705_v10, %v698_v6  ;;  %v674_v27 = vsel %vm324_vm3, %v672_v26, %v673_v17  ;;  %1301 = vmatpush.bf16.msra.mxu0 %v1840_v47  ;;  %1267 = vmatpush.bf16.msra.mxu3 %v1837_v51  ;;  %v1835_v17 = vld [vmem:[#allocation7 + $0x28] sm:$0xff]  ;;  %v2274_v0 = vld [vmem:[%s2492_s5 + $0x2] ss:$0 sm:$0xff]  ;;  %v2277_v2 = vand.u32 127, %v76_v30 }
 0x197   :  { %v676_v24 = vsel %vm324_vm3, %v670_v56, %v671_v23  ;;  %v677_v25 = vsel %vm324_vm3, %v669_v12, %v670_v56  ;;  %v723_v29 = vpack.c.bf16 %v674_v27, %v675_v28  ;;  %v1834_v5 = vld [vmem:[#allocation7 + $0x20] sm:$0xff] }
 0x198   :  { %1659 = vmatmul.msk.bf16.vlgmr.msrb.gmra.mxu0 %vm2104_vm8, %v1658_v3  ;;  %v1661_v60 = vpack.c.bf16 %v676_v24, %v677_v25  ;;  %1329 = vmatpush.bf16.msra.mxu1 %v1849_v7  ;;  %vm1364_vm12 = vcmp.ge.s32.totalorder %v2277_v2, 32  ;;  %vm1365_vm13 = vcmp.lt.s32.totalorder %v2277_v2, 112  ;;  %vm1377_vm14 = vcmp.ge.s32.totalorder %v2277_v2, 64 }
 0x199   :  { %vm2285_vm15 = vmand %vm1364_vm12, %vm1365_vm13 }
 0x19a   :  { %1302 = vmatpush.bf16.msra.mxu0 %v1839_v53  ;;  %1268 = vmatpush.bf16.msra.mxu3 %v1836_v55  ;;  %vm2291_vm0 = vmand %vm1377_vm14, %vm1365_vm13  ;;  %v1369_v23 = vsel %vm2285_vm15, %v2177_v38, %v2054_v36  ;;  %v1370_v36 = vsel %vm2285_vm15, %v2179_v39, %v2049_v33  ;;  %v1831_v39 = vld [vmem:[#allocation7 + $0x8] sm:$0xff]  ;;  %v1371_v51 = vsel %vm2285_vm15, %v2185_v54, %v2057_v42 }
 0x19c   :  { %1330 = vmatpush.bf16.msra.mxu1 %v1848_v57 }
 0x19e   :  { %1303 = vmatpush.bf16.msra.mxu0 %v1838_v45  ;;  %1269 = vmatpush.bf16.msra.mxu3 %v1835_v17 }
 0x1a0   :  { %1668 = vmatmul.msk.bf16.gmra.mxu2 %vm2150_vm11, %v1667_v11  ;;  %1331 = vmatpush.bf16.msra.mxu1 %v1847_v13 }
 0x1a2   :  { %1270 = vmatpush.bf16.msra.mxu3 %v1834_v5  ;;  %v1372_v5 = vsel %vm2285_vm15, %v2196_v8, %v2075_v59  ;;  %v1373_v8 = vsel %vm2285_vm15, %v2202_v19, %v2063_v48 }
 0x1a4   :  { %1332 = vmatpush.bf16.msra.mxu1 %v1846_v63 }
 0x1a8   :  { %932 = vmatmul.bf16.gmra.mxu0 %v717_v22  ;;  %v1833_v22 = vld [vmem:[#allocation7 + $0x18] sm:$0xff] }
 0x1a9   :  { %1271 = vmatpush.bf16.msra.mxu3 %v1833_v22 }
 0x1ad   :  { %1272 = vmatpush.bf16.msra.mxu3 %v1832_v31 }
 0x1b1   :  { %1273 = vmatpush.bf16.msra.mxu3 %v1831_v39 }
 0x1b8   :  { %1662 = vmatmul.msk.bf16.gmra.mxu0 %vm2086_vm5, %v1661_v60 }
 0x1c8   :  { %942 = vmatmul.bf16.gmra.mxu0 %v723_v29 }
 0x1e2   :  { %v957_v58 = vpop.f32.mrf.mxu1 }
 0x1ea   :  { %v959_v3 = vpop.f32.mrf.mxu1 }
 0x1f2   :  { %v962_v56 = vpop.f32.mrf.mxu1 }
 0x1f3   :  { %v986_v61 = vpop.f32.mrf.mxu2 }
 0x1fa   :  { %v964_v37 = vpop.f32.mrf.mxu1 }
 0x1fb   :  { %v988_v6 = vpop.f32.mrf.mxu2 }
 0x202   :  { %v967_v54 = vpop.f32.mrf.mxu1 }
 0x203   :  { %v991_v26 = vpop.f32.mrf.mxu2 }
 0x20b   :  { %v993_v43 = vpop.f32.mrf.mxu2 }
 0x213   :  { %v996_v17 = vpop.f32.mrf.mxu2 }
 0x215   :  { %v928_v10 = vpop.f32.mrf.mxu0 }
 0x216   :  { %v929_v11 = vadd.f32 %v2274_v0, %v928_v10 }
 0x218   :  { %v958_v12 = vadd.f32 %v957_v58, %v929_v11  ;;  %v1830_v11 = vld [vmem:[#allocation7] sm:$0xff] }
 0x219   :  { %1274 = vmatpush.bf16.msra.mxu3 %v1830_v11 }
 0x21a   :  { %v987_v30 = vadd.f32 %v986_v61, %v958_v12 }
 0x21c   :  { %v2295_v18 = vmax.f32 %v987_v30, 0.0 }
 0x21d   :  { %v930_v24 = vpop.f32.mrf.mxu0 }
 0x21e   :  { %v931_v25 = vadd.f32 %v2274_v0, %v930_v24  ;;  %v2305_v60 = vsel %vm2291_vm0, %v2295_v18, %v1369_v23  ;;  %v1038_v7 = vrot.slane %v2295_v18, 1  ;;  %v969_v23 = vpop.f32.mrf.mxu1  ;;  %v998_v24 = vpop.f32.mrf.mxu2 }
 0x220   :  { %v960_v27 = vadd.f32 %v959_v3, %v931_v25 }
 0x222   :  { %v989_v28 = vadd.f32 %v988_v6, %v960_v27 }
 0x224   :  { %v2307_v29 = vmax.f32 %v989_v28, 0.0 }
 0x225   :  { %v933_v1 = vpop.f32.mrf.mxu0 }
 0x226   :  { %v934_v38 = vadd.f32 %v2274_v0, %v933_v1  ;;  %v1063_v34 = vpack.c.bf16 %v2307_v29, %v2295_v18  ;;  %v2319_v40 = vsel %vm2291_vm0, %v2307_v29, %v1370_v36  ;;  %v1039_v33 = vrot.slane %v2307_v29, 1 }
 0x228   :  { %v963_v41 = vadd.f32 %v962_v56, %v934_v38  ;;  %1304 = vmatmul.bf16.vlgmr.msra.gmra.mxu0 %v1063_v34  ;;  %v1052_v42 = vsel %vm349_vm1, %v1038_v7, %v1039_v33  ;;  %v972_v34 = vpop.f32.mrf.mxu1 }
 0x22a   :  { %v992_v46 = vadd.f32 %v991_v26, %v963_v41  ;;  %v1374_v41 = vsel %vm2285_vm15, %v2214_v32, %v2065_v49 }
 0x22c   :  { %v2321_v47 = vmax.f32 %v992_v46, 0.0 }
 0x22d   :  { %v935_v52 = vpop.f32.mrf.mxu0 }
 0x22e   :  { %v936_v53 = vadd.f32 %v2274_v0, %v935_v52  ;;  %v1040_v45 = vrot.slane %v2321_v47, 1  ;;  %v2334_v55 = vsel %vm2291_vm0, %v2321_v47, %v1371_v51 }
 0x230   :  { %v965_v57 = vadd.f32 %v964_v37, %v936_v53  ;;  %v1051_v58 = vsel %vm349_vm1, %v1039_v33, %v1040_v45  ;;  %v1001_v33 = vpop.f32.mrf.mxu2 }
 0x231   :  { %v1064_v61 = vpack.c.bf16 %v1051_v58, %v1052_v42  ;;  %v974_v42 = vpop.f32.mrf.mxu1 }
 0x232   :  { %v994_v13 = vadd.f32 %v993_v43, %v965_v57 }
 0x233   :  { %1333 = vmatmul.bf16.vlgmr.msra.gmra.mxu1 %v1064_v61 }
 0x234   :  { %v2342_v63 = vmax.f32 %v994_v13, 0.0 }
 0x235   :  { %v938_v3 = vpop.f32.mrf.mxu0 }
 0x236   :  { %v939_v6 = vadd.f32 %v2274_v0, %v938_v3  ;;  %v1066_v10 = vpack.c.bf16 %v2342_v63, %v2321_v47  ;;  %v2354_v12 = vsel %vm2291_vm0, %v2342_v63, %v1372_v5  ;;  %v1041_v59 = vrot.slane %v2342_v63, 1 }
 0x237   :  { %v1017_v15 = vrot.slane %v2342_v63, 7 }
 0x238   :  { %v968_v30 = vadd.f32 %v967_v54, %v939_v6  ;;  %1309 = vmatmul.bf16.gmra.mxu0 %v1066_v10  ;;  %v1050_v36 = vsel %vm349_vm1, %v1040_v45, %v1041_v59  ;;  %v1375_v45 = vsel %vm2285_vm15, %v2220_v44, %v2112_v20  ;;  %v1015_v20 = vrot.slane %v2307_v29, 7 }
 0x239   :  { %v1014_v6 = vrot.slane %v2295_v18, 7 }
 0x23a   :  { %v997_v22 = vadd.f32 %v996_v17, %v968_v30  ;;  %v1003_v17 = vpop.f32.mrf.mxu2 }
 0x23c   :  { %v2356_v56 = vmax.f32 %v997_v22, 0.0  ;;  %v1028_v22 = vsel %vm324_vm3, %v1014_v6, %v1015_v20 }
 0x23d   :  { %v940_v25 = vpop.f32.mrf.mxu0 }
 0x23e   :  { %v941_v26 = vadd.f32 %v2274_v0, %v940_v25  ;;  %v1042_v27 = vrot.slane %v2356_v56, 1  ;;  %v2368_v28 = vsel %vm2291_vm0, %v2356_v56, %v1373_v8  ;;  %v1016_v8 = vrot.slane %v2321_v47, 7 }
 0x240   :  { %v970_v31 = vadd.f32 %v969_v23, %v941_v26  ;;  %v1049_v1 = vsel %vm349_vm1, %v1041_v59, %v1042_v27  ;;  %v1026_v16 = vsel %vm324_vm3, %v1016_v8, %v1017_v15  ;;  %v1018_v26 = vrot.slane %v2356_v56, 7 }
 0x241   :  { %v1772_v38 = vpack.c.bf16 %v1049_v1, %v1050_v36 }
 0x242   :  { %v999_v48 = vadd.f32 %v998_v24, %v970_v31  ;;  %v1027_v24 = vsel %vm324_vm3, %v1015_v20, %v1016_v8  ;;  %v1025_v50 = vsel %vm324_vm3, %v1017_v15, %v1018_v26 }
 0x243   :  { %1773 = vmatmul.msk.bf16.gmra.mxu1 %vm2115_vm9, %v1772_v38  ;;  %v1065_v25 = vpack.c.bf16 %v1026_v16, %v1027_v24  ;;  %v2443_v38 = vld [vmem:[%s2492_s5 + $0x3] ss:$0 sm:$0xff]  ;;  %s1984_s5 = smov [#allocation8]  }
 0x244   :  { %v1011_v19 = vmax.f32 %v999_v48, 0.0  ;;  %s1413_s27 = sshll.u32 %s1984_s5, 4  ;;  %s1414_s27 = int_to_ptr.vmem [resolvable:$true] %s1413_s27 }
 0x245   :  { %v943_v37 = vpop.f32.mrf.mxu0 }
 0x246   :  { %v944_v43 = vadd.f32 %v2274_v0, %v943_v37  ;;  %v1069_v46 = vpack.c.bf16 %v1011_v19, %v2356_v56  ;;  %v2384_v39 = vsel %vm2291_vm0, %v1011_v19, %v1374_v41  ;;  %v1043_v53 = vrot.slane %v1011_v19, 1 }
 0x247   :  { %v1019_v18 = vrot.slane %v1011_v19, 7 }
 0x248   :  { %v973_v51 = vadd.f32 %v972_v34, %v944_v43  ;;  %1314 = vmatmul.bf16.gmra.mxu0 %v1069_v46  ;;  %v1048_v13 = vsel %vm349_vm1, %v1042_v27, %v1043_v53 }
 0x24a   :  { %v1002_v21 = vadd.f32 %v1001_v33, %v973_v51 }
 0x24c   :  { %v1012_v52 = vmax.f32 %v1002_v21, 0.0 }
 0x24d   :  { %v945_v49 = vpop.f32.mrf.mxu0 }
 0x24e   :  { %v946_v32 = vadd.f32 %v2274_v0, %v945_v49  ;;  %v1044_v57 = vrot.slane %v1012_v52, 1  ;;  %v2393_v58 = vsel %vm2291_vm0, %v1012_v52, %v1375_v45  ;;  %v1376_v0 = vsel %vm2285_vm15, %v2231_v62, %v2092_v9 }
 0x24f   :  { %v1020_v47 = vrot.slane %v1012_v52, 7 }
 0x250   :  { %v975_v54 = vadd.f32 %v974_v42, %v946_v32  ;;  %v1047_v61 = vsel %vm349_vm1, %v1043_v53, %v1044_v57 }
 0x251   :  { %v1070_v3 = vpack.c.bf16 %v1047_v61, %v1048_v13  ;;  %v1023_v31 = vsel %vm324_vm3, %v1019_v18, %v1020_v47 }
 0x252   :  { %v1004_v5 = vadd.f32 %v1003_v17, %v975_v54 }
 0x253   :  { %1343 = vmatmul.bf16.gmra.mxu1 %v1070_v3 }
 0x254   :  { %v1013_v44 = vmax.f32 %v1004_v5, 0.0 }
 0x256   :  { %v1021_v10 = vrot.slane %v1013_v44, 7  ;;  %v1072_v11 = vpack.c.bf16 %v1013_v44, %v1012_v52  ;;  %v2407_v30 = vsel %vm2291_vm0, %v1013_v44, %v1376_v0  ;;  %v1045_v59 = vrot.slane %v1013_v44, 1 }
 0x258   :  { %1319 = vmatmul.bf16.gmra.mxu0 %v1072_v11  ;;  %v1029_v29 = vsel %vm324_vm3, %v1021_v10, %v1014_v6  ;;  %v1046_v9 = vsel %vm349_vm1, %v1044_v57, %v1045_v59  ;;  %v1053_v62 = vsel %vm349_vm1, %v1045_v59, %v1038_v7  ;;  %v1024_v7 = vsel %vm324_vm3, %v1018_v26, %v1019_v18 }
 0x259   :  { %v1766_v23 = vpack.c.bf16 %v1028_v22, %v1029_v29  ;;  %v1775_v14 = vpack.c.bf16 %v1053_v62, %v1046_v9  ;;  %v1769_v63 = vpack.c.bf16 %v1024_v7, %v1025_v50  ;;  %v1022_v27 = vsel %vm324_vm3, %v1020_v47, %v1021_v10 }
 0x25a   :  { %v1071_v1 = vpack.c.bf16 %v1022_v27, %v1023_v31  ;;  %vm1389_vm1 = vcmp.ge.s32.totalorder %v2277_v2, 96 }
 0x25b   :  { %1767 = vmatmul.msk.bf16.vlgmr.msra.gmra.mxu3 %vm2104_vm8, %v1766_v23  ;;  %vm2449_vm2 = vmand %vm1389_vm1, %vm1365_vm13 }
 0x263   :  { %1776 = vmatmul.msk.bf16.gmra.mxu1 %vm2150_vm11, %v1775_v14 }
 0x26b   :  { %1280 = vmatmul.bf16.gmra.mxu3 %v1065_v25 }
 0x27b   :  { %1770 = vmatmul.msk.bf16.gmra.mxu3 %vm2086_vm5, %v1769_v63 }
 0x28b   :  { %1290 = vmatmul.bf16.gmra.mxu3 %v1071_v1 }
 0x2a5   :  { %v1305_v56 = vpop.f32.mrf.mxu0 }
 0x2ad   :  { %v1307_v48 = vpop.f32.mrf.mxu0 }
 0x2b0   :  { %v1334_v36 = vpop.f32.mrf.mxu1 }
 0x2b5   :  { %v1310_v46 = vpop.f32.mrf.mxu0 }
 0x2b8   :  { %v1336_v19 = vpop.f32.mrf.mxu1 }
 0x2bd   :  { %v1312_v42 = vpop.f32.mrf.mxu0 }
 0x2c0   :  { %v1339_v52 = vpop.f32.mrf.mxu1 }
 0x2c5   :  { %v1315_v44 = vpop.f32.mrf.mxu0 }
 0x2c8   :  { %v1341_v61 = vpop.f32.mrf.mxu1 }
 0x2cd   :  { %v1317_v59 = vpop.f32.mrf.mxu0 }
 0x2de   :  { %v1276_v4 = vpop.f32.mrf.mxu3 }
 0x2df   :  { %v1277_v34 = vadd.f32 %v2443_v38, %v1276_v4 }
 0x2e1   :  { %v1306_v37 = vadd.f32 %v1305_v56, %v1277_v34 }
 0x2e3   :  { %v1335_v41 = vadd.f32 %v1334_v36, %v1306_v37 }
 0x2e5   :  { %v1354_v43 = vmax.f32 %v1335_v41, 0.0 }
 0x2e6   :  { %v1278_v33 = vpop.f32.mrf.mxu3 }
 0x2e7   :  { %v1393_v51 = vsel %vm2449_vm2, %v1354_v43, %v2305_v60  ;;  %v1279_v21 = vadd.f32 %v2443_v38, %v1278_v33 }
 0x2e8   :  { %1401 = vst [vmem:[#allocation8] sm:$0xff] %v1393_v51 }
 0x2e9   :  { %v1308_v53 = vadd.f32 %v1307_v48, %v1279_v21 }
 0x2eb   :  { %v1337_v45 = vadd.f32 %v1336_v19, %v1308_v53 }
 0x2ed   :  { %v1355_v49 = vmax.f32 %v1337_v45, 0.0 }
 0x2ee   :  { %v1281_v32 = vpop.f32.mrf.mxu3 }
 0x2ef   :  { %v1394_v2 = vsel %vm2449_vm2, %v1355_v49, %v2319_v40  ;;  %v1282_v57 = vadd.f32 %v2443_v38, %v1281_v32  ;;  %v1344_v40 = vpop.f32.mrf.mxu1 }
 0x2f0   :  { %1402 = vst [vmem:[#allocation8 + $0x8] sm:$0xff] %v1394_v2 }
 0x2f1   :  { %v1311_v54 = vadd.f32 %v1310_v46, %v1282_v57 }
 0x2f3   :  { %v1340_v13 = vadd.f32 %v1339_v52, %v1311_v54 }
 0x2f5   :  { %v1356_v60 = vmax.f32 %v1340_v13, 0.0 }
 0x2f6   :  { %v1283_v17 = vpop.f32.mrf.mxu3 }
 0x2f7   :  { %v1395_v3 = vsel %vm2449_vm2, %v1356_v60, %v2334_v55  ;;  %v1284_v5 = vadd.f32 %v2443_v38, %v1283_v17  ;;  %v1346_v9 = vpop.f32.mrf.mxu1 }
 0x2f8   :  { %1403 = vst [vmem:[#allocation8 + $0x10] sm:$0xff] %v1395_v3 }
 0x2f9   :  { %v1313_v20 = vadd.f32 %v1312_v42, %v1284_v5 }
 0x2fb   :  { %v1342_v0 = vadd.f32 %v1341_v61, %v1313_v20 }
 0x2fd   :  { %v1357_v6 = vmax.f32 %v1342_v0, 0.0 }
 0x2fe   :  { %v1286_v10 = vpop.f32.mrf.mxu3 }
 0x2ff   :  { %v1396_v11 = vsel %vm2449_vm2, %v1357_v6, %v2354_v12  ;;  %v1287_v22 = vadd.f32 %v2443_v38, %v1286_v10  ;;  %v1320_v12 = vpop.f32.mrf.mxu0  ;;  %v1349_v7 = vpop.f32.mrf.mxu1 }
 0x300   :  { %1404 = vst [vmem:[#allocation8 + $0x18] sm:$0xff] %v1396_v11 }
 0x301   :  { %v1316_v29 = vadd.f32 %v1315_v44, %v1287_v22 }
 0x303   :  { %v1345_v23 = vadd.f32 %v1344_v40, %v1316_v29 }
 0x305   :  { %v1358_v55 = vmax.f32 %v1345_v23, 0.0 }
 0x306   :  { %v1288_v62 = vpop.f32.mrf.mxu3 }
 0x307   :  { %v1397_v14 = vsel %vm2449_vm2, %v1358_v55, %v2368_v28  ;;  %v1289_v15 = vadd.f32 %v2443_v38, %v1288_v62  ;;  %v1322_v1 = vpop.f32.mrf.mxu0  ;;  %v1351_v36 = vpop.f32.mrf.mxu1 }
 0x308   :  { %1405 = vst [vmem:[#allocation8 + $0x20] sm:$0xff] %v1397_v14 }
 0x309   :  { %v1318_v8 = vadd.f32 %v1317_v59, %v1289_v15 }
 0x30b   :  { %v1347_v16 = vadd.f32 %v1346_v9, %v1318_v8 }
 0x30d   :  { %v1359_v24 = vmax.f32 %v1347_v16, 0.0 }
 0x30e   :  { %v1291_v25 = vpop.f32.mrf.mxu3 }
 0x30f   :  { %v1398_v18 = vsel %vm2449_vm2, %v1359_v24, %v2384_v39  ;;  %v1292_v26 = vadd.f32 %v2443_v38, %v1291_v25 }
 0x310   :  { %1406 = vst [vmem:[#allocation8 + $0x28] sm:$0xff] %v1398_v18 }
 0x311   :  { %v1321_v50 = vadd.f32 %v1320_v12, %v1292_v26 }
 0x313   :  { %v1350_v63 = vadd.f32 %v1349_v7, %v1321_v50 }
 0x315   :  { %v1360_v47 = vmax.f32 %v1350_v63, 0.0 }
 0x316   :  { %v1293_v28 = vpop.f32.mrf.mxu3 }
 0x317   :  { %v1399_v27 = vsel %vm2449_vm2, %v1360_v47, %v2393_v58  ;;  %v1294_v31 = vadd.f32 %v2443_v38, %v1293_v28 }
 0x318   :  { %1407 = vst [vmem:[#allocation8 + $0x30] sm:$0xff] %v1399_v27 }
 0x319   :  { %v1323_v56 = vadd.f32 %v1322_v1, %v1294_v31 }
 0x31b   :  { %v1352_v39 = vadd.f32 %v1351_v36, %v1323_v56 }
 0x31d   :  { %v1361_v48 = vmax.f32 %v1352_v39, 0.0 }
 0x31f   :  { %v1400_v58 = vsel %vm2449_vm2, %v1361_v48, %v2407_v30 }
 0x320   :  { %1408 = vst [vmem:[#allocation8 + $0x38] sm:$0xff] %v1400_v58 }
 0x321   :  { %1421 = dma.vmem_to_hbm [thread:$0]  %s1414_s27, 1024, %s1416_s30, [#allocation4], %s1985_s7, %s1985_s7, %s1986_s8  }
 0x322   :  { %1976 = dma.done.wait [#allocation4], 1024  }
 0x323   :  { %1977 = vsyncadd [#allocation4], 4294966272 }
 0x324   :  { %1426 = vsyncpa [#allocation3], 1 }
 0x325   :  { %1427 = vsyncpa [#allocation6], 1 }
 0x326   :  { %1428 = vsyncpa [#allocation4], 1 }

</bundles_post_ra>
